<compile_context>
chip_gen: v6e
topology: v6e:2x2x1
jax: 0.10.0
libtpu: 0.0.40
codegen_flags: <defaults>
</compile_context>

<pallas_src>
import jax
import jax.numpy as jnp
from jax.experimental import pallas as pl
from jax.experimental.pallas import tpu as pltpu


# Max batch-tile width (lanes).  ~96 B/column double-buffered
# (bf16 x padded to 16 sublanes + bf16 out padded to 8 sublanes, x2 buffers),
# so 64K columns ~= 6 MiB VMEM: safe on v5e/v6e/v7x default scoped limits.
# (On v7x one could go larger still; keep a single constant for simplicity.)
MAX_TILE_B = 65536

FEAT_IN = 10   # input features
FEAT_OUT = 4   # output classes
_LAYER_DIMS = [(10, 10), (10, 8), (8, 8), (8, 4)]   # (in, out) per layer


def _round_up(x, m):
    return ((x + m - 1) // m) * m


def _linear(wb_ref, h):
    """y = W @ h + b with W,b packed as wb = [W | b] (bf16), f32 accumulation."""
    in_dim = wb_ref.shape[1] - 1                      # static
    w = wb_ref[:, :in_dim]                            # [out, in]  bf16
    b = wb_ref[:, in_dim:].astype(jnp.float32)        # [out, 1]   f32
    return jnp.dot(w, h, preferred_element_type=jnp.float32) + b


def mlp2_kernel(x_ref, wb1_ref, wb2_ref, wb3_ref, wb4_ref, o_ref):
    # x tile: [10, TILE_B] bf16 (batch on the lane axis).
    x = x_ref[...]

    # Three tanh layers: MXU dots accumulate in f32, activations kept bf16
    # (bf16 tanh uses the EUP's bf16 path on v6e/v7x; still correct on v5e).
    h1 = jnp.tanh(_linear(wb1_ref, x).astype(jnp.bfloat16))    # [10, T]
    h2 = jnp.tanh(_linear(wb2_ref, h1).astype(jnp.bfloat16))   # [8,  T]
    h3 = jnp.tanh(_linear(wb3_ref, h2).astype(jnp.bfloat16))   # [8,  T]

    # Final layer + softmax over the feature axis (axis=0 in this transposed
    # layout == torch.softmax(..., dim=1) on [B, 4]).  Exact divide so rows
    # sum to 1 to f32 accuracy.
    logits = _linear(wb4_ref, h3)                               # [4, T] f32
    m = jnp.max(logits, axis=0, keepdims=True)
    e = jnp.exp(logits - m)
    denom = jnp.sum(e, axis=0, keepdims=True)
    o_ref[...] = (e / denom).astype(o_ref.dtype)


def mlp2_forward(x, params, *, max_tile_b=MAX_TILE_B):
    """Forward pass of MLP_2.

    x:      [B, 10] float32 (PyTorch layout).
    params: dict with PyTorch-native weights w{i}: [out, in], biases b{i}: [out].
    Returns [B, 4] float32 softmax probabilities.
    """
    B = x.shape[0]

    # Tile the batch: as few tiles as the VMEM cap allows, then balance the
    # tile width so the last tile carries minimal padding.
    n_tiles = pl.cdiv(B, max_tile_b)
    tile_b = _round_up(pl.cdiv(B, n_tiles), 128)
    n_tiles = pl.cdiv(B, tile_b)
    B_pad = n_tiles * tile_b

    # Batch on the lane axis; stream x as bf16 (halves the dominant HBM read).
    x_t = x.T.astype(jnp.bfloat16)                    # [10, B]
    if B_pad != B:
        x_t = jnp.pad(x_t, ((0, 0), (0, B_pad - B)))  # [10, B_pad]

    # Pack each layer's (W, b) into one resident bf16 array [out, in+1].
    wbs = []
    for i in range(1, 5):
        w = params[f"w{i}"].astype(jnp.bfloat16)                 # [out, in]
        b = params[f"b{i}"].reshape(-1, 1).astype(jnp.bfloat16)  # [out, 1]
        wbs.append(jnp.concatenate([w, b], axis=1))              # [out, in+1]

    def resident(shape):
        # Full-array block, same block index every grid step -> DMA'd once,
        # stays VMEM-resident across all batch tiles.
        return pl.BlockSpec(shape, lambda i: (0, 0))

    out_padded = pl.pallas_call(
        mlp2_kernel,
        out_shape=jax.ShapeDtypeStruct((FEAT_OUT, B_pad), jnp.bfloat16),
        grid=(n_tiles,),
        in_specs=[pl.BlockSpec((FEAT_IN, tile_b), lambda i: (0, i))] +
                 [resident(wb.shape) for wb in wbs],
        out_specs=pl.BlockSpec((FEAT_OUT, tile_b), lambda i: (0, i)),
        compiler_params=pltpu.CompilerParams(
            dimension_semantics=("parallel",)),
    )(x_t, *wbs)

    # Back to the PyTorch layout [B, 4] in f32 (slice + transpose + cast fuse).
    return out_padded[:, :B].T.astype(jnp.float32)


def init_params(key):
    """Deterministic init matching nn.Linear (W PyTorch-native [out, in], b [out])."""
    params = {}
    for i, (fin, fout) in enumerate(_LAYER_DIMS, start=1):
        key, kw, kb = jax.random.split(key, 3)
        bound = 1.0 / (fin ** 0.5)
        params[f"w{i}"] = jax.random.uniform(
            kw, (fout, fin), jnp.float32, minval=-bound, maxval=bound)
        params[f"b{i}"] = jax.random.uniform(
            kb, (fout,), jnp.float32, minval=-bound, maxval=bound)
    return params


def mlp2_reference(x, params):
    """Pure-JAX f32 reference (same math as the PyTorch module)."""
    h = x
    for i in range(1, 4):
        h = jnp.tanh(h @ params[f"w{i}"].T + params[f"b{i}"])
    logits = h @ params["w4"].T + params["b4"]
    return jax.nn.softmax(logits, axis=1)


if __name__ == "__main__":
    key = jax.random.PRNGKey(0)
    kp, kx = jax.random.split(key)
    params = init_params(kp)

    # Small batch; deliberately not a multiple of 128 to exercise the padding path.
    B = 1000
    x = jax.random.normal(kx, (B, FEAT_IN), jnp.float32)

    out = mlp2_forward(x, params)
    out = jax.block_until_ready(out)

    assert out.shape == (B, FEAT_OUT)
    # Softmax rows sum to ~1 (bf16 output rounding -> small tolerance).
    assert jnp.allclose(jnp.sum(out, axis=1), 1.0, atol=1e-2)
    # Compare against the f32 reference (bf16 weights/activations/output in the
    # kernel are an intentional precision tradeoff -> loose tolerance).
    ref = mlp2_reference(x, params)
    assert jnp.allclose(out, ref, atol=5e-2), float(jnp.max(jnp.abs(out - ref)))
    print("KERNEL_OK")
</pallas_src>

<mosaic_0001>
module attributes {stable_mosaic.version = 11 : i64} {
  func.func @mlp2_kernel(%arg0: i32, %arg1: memref<10x1024xbf16, #tpu.memory_space<vmem>>, %arg2: memref<10x11xbf16, #tpu.memory_space<vmem>>, %arg3: memref<8x11xbf16, #tpu.memory_space<vmem>>, %arg4: memref<8x9xbf16, #tpu.memory_space<vmem>>, %arg5: memref<4x9xbf16, #tpu.memory_space<vmem>>, %arg6: memref<4x1024xbf16, #tpu.memory_space<vmem>>) attributes {dimension_semantics = [#tpu.dimension_semantics<parallel>], iteration_bounds = array<i64: 1>, scalar_prefetch = 0 : i64, scratch_operands = 0 : i64, tpu.core_type = #tpu.core_type<tc>, window_params = [{transform_indices = @transform_0, window_bounds = array<i64: 10, 1024>}, {pipeline_mode = #tpu.pipeline_mode<synchronous>, transform_indices = @transform_1, window_bounds = array<i64: 10, 11>}, {pipeline_mode = #tpu.pipeline_mode<synchronous>, transform_indices = @transform_2, window_bounds = array<i64: 8, 11>}, {pipeline_mode = #tpu.pipeline_mode<synchronous>, transform_indices = @transform_3, window_bounds = array<i64: 8, 9>}, {pipeline_mode = #tpu.pipeline_mode<synchronous>, transform_indices = @transform_4, window_bounds = array<i64: 4, 9>}, {transform_indices = @transform_5, window_bounds = array<i64: 4, 1024>}]} {
    %c0 = arith.constant 0 : index
    %c0_0 = arith.constant 0 : index
    %0 = vector.load %arg1[%c0, %c0_0] : memref<10x1024xbf16, #tpu.memory_space<vmem>>, vector<10x1024xbf16>
    %c0_1 = arith.constant 0 : index
    %c0_2 = arith.constant 0 : index
    %1 = vector.load %arg2[%c0_1, %c0_2] : memref<10x11xbf16, #tpu.memory_space<vmem>>, vector<10x10xbf16>
    %c0_3 = arith.constant 0 : index
    %c10 = arith.constant 10 : index
    %2 = vector.load %arg2[%c0_3, %c10] : memref<10x11xbf16, #tpu.memory_space<vmem>>, vector<10x1xbf16>
    %3 = arith.extf %2 : vector<10x1xbf16> to vector<10x1xf32>
    %cst = arith.constant dense<0.000000e+00> : vector<10x1024xf32>
    %4 = tpu.matmul %1, %0, %cst {dimension_numbers = #tpu.dot_dimension_numbers<[1], [0], [0], [1], [0, 0, 1, 1], [], []>} : vector<10x10xbf16>, vector<10x1024xbf16>, vector<10x1024xf32> -> vector<10x1024xf32>
    %5 = vector.broadcast %3 : vector<10x1xf32> to vector<10x1024xf32>
    %6 = arith.addf %4, %5 : vector<10x1024xf32>
    %7 = arith.truncf %6 : vector<10x1024xf32> to vector<10x1024xbf16>
    %8 = math.tanh %7 : vector<10x1024xbf16>
    %c0_4 = arith.constant 0 : index
    %c0_5 = arith.constant 0 : index
    %9 = vector.load %arg3[%c0_4, %c0_5] : memref<8x11xbf16, #tpu.memory_space<vmem>>, vector<8x10xbf16>
    %c0_6 = arith.constant 0 : index
    %c10_7 = arith.constant 10 : index
    %10 = vector.load %arg3[%c0_6, %c10_7] : memref<8x11xbf16, #tpu.memory_space<vmem>>, vector<8x1xbf16>
    %11 = arith.extf %10 : vector<8x1xbf16> to vector<8x1xf32>
    %cst_8 = arith.constant dense<0.000000e+00> : vector<8x1024xf32>
    %12 = tpu.matmul %9, %8, %cst_8 {dimension_numbers = #tpu.dot_dimension_numbers<[1], [0], [0], [1], [0, 0, 1, 1], [], []>} : vector<8x10xbf16>, vector<10x1024xbf16>, vector<8x1024xf32> -> vector<8x1024xf32>
    %13 = vector.broadcast %11 : vector<8x1xf32> to vector<8x1024xf32>
    %14 = arith.addf %12, %13 : vector<8x1024xf32>
    %15 = arith.truncf %14 : vector<8x1024xf32> to vector<8x1024xbf16>
    %16 = math.tanh %15 : vector<8x1024xbf16>
    %c0_9 = arith.constant 0 : index
    %c0_10 = arith.constant 0 : index
    %17 = vector.load %arg4[%c0_9, %c0_10] : memref<8x9xbf16, #tpu.memory_space<vmem>>, vector<8x8xbf16>
    %c0_11 = arith.constant 0 : index
    %c8 = arith.constant 8 : index
    %18 = vector.load %arg4[%c0_11, %c8] : memref<8x9xbf16, #tpu.memory_space<vmem>>, vector<8x1xbf16>
    %19 = arith.extf %18 : vector<8x1xbf16> to vector<8x1xf32>
    %cst_12 = arith.constant dense<0.000000e+00> : vector<8x1024xf32>
    %20 = tpu.matmul %17, %16, %cst_12 {dimension_numbers = #tpu.dot_dimension_numbers<[1], [0], [0], [1], [0, 0, 1, 1], [], []>} : vector<8x8xbf16>, vector<8x1024xbf16>, vector<8x1024xf32> -> vector<8x1024xf32>
    %21 = vector.broadcast %19 : vector<8x1xf32> to vector<8x1024xf32>
    %22 = arith.addf %20, %21 : vector<8x1024xf32>
    %23 = arith.truncf %22 : vector<8x1024xf32> to vector<8x1024xbf16>
    %24 = math.tanh %23 : vector<8x1024xbf16>
    %c0_13 = arith.constant 0 : index
    %c0_14 = arith.constant 0 : index
    %25 = vector.load %arg5[%c0_13, %c0_14] : memref<4x9xbf16, #tpu.memory_space<vmem>>, vector<4x8xbf16>
    %c0_15 = arith.constant 0 : index
    %c8_16 = arith.constant 8 : index
    %26 = vector.load %arg5[%c0_15, %c8_16] : memref<4x9xbf16, #tpu.memory_space<vmem>>, vector<4x1xbf16>
    %27 = arith.extf %26 : vector<4x1xbf16> to vector<4x1xf32>
    %cst_17 = arith.constant dense<0.000000e+00> : vector<4x1024xf32>
    %28 = tpu.matmul %25, %24, %cst_17 {dimension_numbers = #tpu.dot_dimension_numbers<[1], [0], [0], [1], [0, 0, 1, 1], [], []>} : vector<4x8xbf16>, vector<8x1024xbf16>, vector<4x1024xf32> -> vector<4x1024xf32>
    %29 = vector.broadcast %27 : vector<4x1xf32> to vector<4x1024xf32>
    %30 = arith.addf %28, %29 : vector<4x1024xf32>
    %cst_18 = arith.constant dense<0xFF800000> : vector<1024xf32>
    %31 = vector.multi_reduction <maximumf>, %30, %cst_18 [0] : vector<4x1024xf32> to vector<1024xf32>
    %32 = vector.shape_cast %31 : vector<1024xf32> to vector<1x1024xf32>
    %33 = vector.broadcast %32 : vector<1x1024xf32> to vector<4x1024xf32>
    %34 = arith.subf %30, %33 : vector<4x1024xf32>
    %35 = math.exp %34 : vector<4x1024xf32>
    %cst_19 = arith.constant dense<0.000000e+00> : vector<1024xf32>
    %36 = vector.multi_reduction <add>, %35, %cst_19 [0] : vector<4x1024xf32> to vector<1024xf32>
    %37 = vector.shape_cast %36 : vector<1024xf32> to vector<1x1024xf32>
    %38 = vector.broadcast %37 : vector<1x1024xf32> to vector<4x1024xf32>
    %39 = arith.divf %35, %38 : vector<4x1024xf32>
    %40 = arith.truncf %39 : vector<4x1024xf32> to vector<4x1024xbf16>
    %c0_20 = arith.constant 0 : index
    %c0_21 = arith.constant 0 : index
    %41 = vector.load %arg6[%c0_20, %c0_21] : memref<4x1024xbf16, #tpu.memory_space<vmem>>, vector<4x1024xbf16>
    tpu.vector_store %arg6[%c0_20, %c0_21], %40 {strides = array<i32>} : memref<4x1024xbf16, #tpu.memory_space<vmem>>, vector<4x1024xbf16>,
    return
  }
  func.func @transform_0(%arg0: i32) -> (i32, i32) {
    %c0_i32 = arith.constant 0 : i32
    %c0_i32_0 = arith.constant 0 : i32
    return %c0_i32, %arg0 : i32, i32
  }
  func.func @transform_1(%arg0: i32) -> (i32, i32) {
    %c0_i32 = arith.constant 0 : i32
    %c0_i32_0 = arith.constant 0 : i32
    %c0_i32_1 = arith.constant 0 : i32
    return %c0_i32, %c0_i32_0 : i32, i32
  }
  func.func @transform_2(%arg0: i32) -> (i32, i32) {
    %c0_i32 = arith.constant 0 : i32
    %c0_i32_0 = arith.constant 0 : i32
    %c0_i32_1 = arith.constant 0 : i32
    return %c0_i32, %c0_i32_0 : i32, i32
  }
  func.func @transform_3(%arg0: i32) -> (i32, i32) {
    %c0_i32 = arith.constant 0 : i32
    %c0_i32_0 = arith.constant 0 : i32
    %c0_i32_1 = arith.constant 0 : i32
    return %c0_i32, %c0_i32_0 : i32, i32
  }
  func.func @transform_4(%arg0: i32) -> (i32, i32) {
    %c0_i32 = arith.constant 0 : i32
    %c0_i32_0 = arith.constant 0 : i32
    %c0_i32_1 = arith.constant 0 : i32
    return %c0_i32, %c0_i32_0 : i32, i32
  }
  func.func @transform_5(%arg0: i32) -> (i32, i32) {
    %c0_i32 = arith.constant 0 : i32
    %c0_i32_0 = arith.constant 0 : i32
    return %c0_i32, %arg0 : i32, i32
  }
}

</mosaic_0001>

<bundles_post_ra>
// kernel: tpu_custom_call.1
= control target key start
LH: loop header
LB: loop body
LE: loop exit
PB: predicated region body
PF: predicated region fallthrough
CT: control target
= control target key end

     0   :  { %10 = vsyncpa [#allocation3], 0  ;;  %s1648_s0 = inlined_call_operand.hbm [shape: bf16[10,1024], index: 0, kind: input, shape index: {}]   ;;  %s1649_s1 = inlined_call_operand.hbm [shape: bf16[10,11], index: 1, kind: input, shape index: {}]   ;;  %s1650_s2 = inlined_call_operand.hbm [shape: bf16[8,11], index: 2, kind: input, shape index: {}]   ;;  %s1651_s3 = inlined_call_operand.vmem [shape: bf16[8,9], index: 3, kind: input, shape index: {}]   ;;  %s1652_s4 = inlined_call_operand.vmem [shape: bf16[4,9], index: 4, kind: input, shape index: {}]   ;;  %s1653_s5 = inlined_call_operand.hbm [shape: bf16[4,1024], index: 5, kind: output, shape index: {}]  }
   0x1   :  { %11 = vsyncpa [#allocation6], 0 }
   0x2   :  { %12 = vsyncpa [#allocation4], 0  ;;  %s1430_s18 = smov [#allocation5]  }
   0x3   :  { %s30_s19 = sshll.u32 %s1430_s18, 4  ;;  %s31_s19 = int_to_ptr.vmem [resolvable:$true] %s30_s19 }
   0x4   :  { %s1352_s20 = scalar_lea.vmem %s31_s19, 128  ;;  %p1357_p1 = scmp.lt.s32.totalorder %s31_s19, %s31_s19 }
   0x5   :  { %p1353_p0 = scmp.ne.s32.totalorder %s31_s19, %s1352_s20  ;;  %p1358_p2 = scmp.lt.s32.totalorder %s1352_s20, %s1352_s20 }
   0x7   :  { %p1359_p3 = por %p1358_p2, %p1357_p1 }
   0x9   :  { %p1360_p4 = pnand %p1359_p3, %p1353_p0 }
   0xb   :  { %1363 = shalt.err (!%p1360_p4)
}
   0xc   :  { %s1431_s21 = smov 64   ;;  %s1432_s22 = smov 4  }
   0xd   :  { %36 = dma.hbm_to_vmem [thread:$0]  %s1649_s1, 128, %s31_s19, [#allocation6], %s1431_s21, %s1431_s21, %s1432_s22  }
   0xe   :  { %s1433_s25 = smov [#allocation2]  }
   0xf   :  { %s18_s26 = sshll.u32 %s1433_s25, 4  ;;  %s19_s26 = int_to_ptr.vmem [resolvable:$true] %s18_s26 }
  0x10   :  { %s1372_s27 = scalar_lea.vmem %s19_s26, 1024  ;;  %p1377_p6 = scmp.lt.s32.totalorder %s19_s26, %s19_s26 }
  0x11   :  { %p1373_p5 = scmp.ne.s32.totalorder %s19_s26, %s1372_s27  ;;  %p1378_p7 = scmp.lt.s32.totalorder %s1372_s27, %s1372_s27 }
  0x13   :  { %p1379_p8 = por %p1378_p7, %p1377_p6 }
  0x15   :  { %p1380_p9 = pnand %p1379_p8, %p1373_p5 }
  0x17   :  { %1383 = shalt.err (!%p1380_p9)
}
  0x18   :  { %s1434_s28 = smov 512   ;;  %s1435_s29 = smov 32  }
  0x19   :  { %24 = dma.hbm_to_vmem [thread:$0]  %s1648_s0, 1024, %s19_s26, [#allocation3], %s1434_s28, %s1434_s28, %s1435_s29  }
  0x1a   :  { %s1436_s7 = smov [#allocation7]  }
  0x1b   :  { %s43_s8 = sshll.u32 %s1436_s7, 4  ;;  %s44_s8 = int_to_ptr.vmem [resolvable:$true] %s43_s8 }
  0x1c   :  { %s1392_s1 = scalar_lea.vmem %s44_s8, 64  ;;  %p1397_p11 = scmp.lt.s32.totalorder %s44_s8, %s44_s8 }
  0x1d   :  { %p1393_p10 = scmp.ne.s32.totalorder %s44_s8, %s1392_s1  ;;  %p1398_p12 = scmp.lt.s32.totalorder %s1392_s1, %s1392_s1 }
  0x1f   :  { %p1399_p13 = por %p1398_p12, %p1397_p11 }
  0x21   :  { %p1400_p0 = pnand %p1399_p13, %p1393_p10 }
  0x23   :  { %1403 = shalt.err (!%p1400_p0)
}
  0x24   :  { %46 = dma.hbm_to_vmem [thread:$0]  %s1650_s2, 64, %s44_s8, [#allocation6]  }
  0x25   :  { %1424 = dma.done.wait [#allocation3], 1024  }
  0x26   :  { %1425 = vsyncadd [#allocation3], 4294966272 }
  0x27   :  { %1426 = dma.done.wait [#allocation6], 192  }
  0x28   :  { %1427 = vsyncadd [#allocation6], 4294967104  ;;  %v1437_v0 = vmov 0   ;;  %v1438_v1 = vmov 10   ;;  %v61_v2 = vld [vmem:[#allocation2] sm:$0xff]  ;;  %vm124_vm0 = vcmask 1044480  }
  0x29   :  { %181 = vmatprep.mubr.bf16.mxu0 %v1437_v0  ;;  %224 = vmatprep.mubr.bf16.mxu1 %v1437_v0  ;;  %v65_v3 = vld [vmem:[#allocation2 + $0x20] sm:$0x11]  ;;  %v62_v4 = vld [vmem:[#allocation2 + $0x8] sm:$0xff]  ;;  %v63_v13 = vld [vmem:[#allocation2 + $0x10] sm:$0xff]  ;;  %vm120_vm1 = vcmask 80896   ;;  %vm562_vm2 = vcmask 1043456  }
  0x2a   :  { %1255 = vset.pattern.permute.xlu0 %v1438_v1  ;;  %v1199_v5 = vcombine.high %v61_v2, %v65_v3  ;;  %v66_v6 = vld [vmem:[#allocation2 + $0x28] sm:$0x11]  ;;  %v1198_v7 = vcombine.low %v61_v2, %v65_v3  ;;  %v69_v8 = vld [vmem:[#allocation5] sm:$0xf]  ;;  %v70_v9 = vld [vmem:[#allocation5 + $0x4] sm:$0x1] }
  0x2b   :  { %v1201_v10 = vcombine.high %v62_v4, %v66_v6  ;;  %v1200_v11 = vcombine.low %v62_v4, %v66_v6  ;;  %v1197_v12 = vcombine.low %v69_v8, %v70_v9  ;;  %v67_v14 = vld [vmem:[#allocation2 + $0x30] sm:$0x11]  ;;  %v64_v15 = vld [vmem:[#allocation2 + $0x18] sm:$0xff]  ;;  %v71_v16 = vunpack.c.l.bf16 %v69_v8  ;;  %v1488_v25 = vld [vmem:[#allocation7] sm:$0xf] }
  0x2c   :  { %1206 = vmatprep.subr.msk.bf16.mxu0 %vm124_vm0, %v1199_v5  ;;  %v126_v17 = vsel %vm124_vm0, %v1198_v7, 0  ;;  %v1203_v18 = vcombine.high %v63_v13, %v67_v14  ;;  %v68_v19 = vld [vmem:[#allocation2 + $0x38] sm:$0x11]  ;;  %v1202_v20 = vcombine.low %v63_v13, %v67_v14  ;;  %v72_v21 = vunpack.c.l.bf16 %v70_v9 }
  0x2d   :  { %1208 = vmatprep.subr.msk.bf16.mxu1 %vm124_vm0, %v1201_v10  ;;  %164 = vmatpush1.bf16.msra.mxu0 %v126_v17  ;;  %v132_v22 = vsel %vm124_vm0, %v1200_v11, 0  ;;  %v1205_v23 = vcombine.high %v64_v15, %v68_v19  ;;  %v1204_v24 = vcombine.low %v64_v15, %v68_v19  ;;  %v338_v29 = vunpack.c.l.bf16 %v1488_v25 }
  0x2e   :  { %207 = vmatpush1.bf16.msra.mxu1 %v132_v22  ;;  %1210 = vmatprep.subr.msk.bf16.mxu0 %vm124_vm0, %v1203_v18  ;;  %v138_v26 = vsel %vm124_vm0, %v1202_v20, 0  ;;  %v1256_v27 = vpack.i.bf16 %v72_v21, %v71_v16  ;;  %v1526_v22 = vld [vmem:[%s1651_s3] sm:$0xf]  ;;  %vm558_vm3 = vcmask 64512   ;;  %s1442_s3 = smov [#allocation8]  }
  0x2f   :  { %1212 = vmatprep.subr.msk.bf16.mxu1 %vm124_vm0, %v1205_v23  ;;  %v144_v28 = vsel %vm124_vm0, %v1204_v24, 0  ;;  %v552_v23 = vunpack.c.l.bf16 %v1526_v22  ;;  %v1532_v24 = vld [vmem:[%s1652_s4] sm:$0x3]  ;;  %s1187_s4 = sshll.u32 %s1442_s3, 4  ;;  %s1188_s4 = int_to_ptr.vmem [resolvable:$true] %s1187_s4 }
  0x30   :  { %1207 = vmatmul.mubr.msk.bf16.vlgmr.msra.gmra.mxu0 %vm120_vm1, %v1197_v12  ;;  %1257 = vperm.xlu0 %1255, %v1256_v27   ;;  %s1404_s13 = scalar_lea.vmem %s1188_s4, 256  ;;  %p1409_p2 = scmp.lt.s32.totalorder %s1188_s4, %s1188_s4 }
  0x31   :  { %1209 = vmatmul.mubr.msk.bf16.vlgmr.msra.gmra.mxu1 %vm120_vm1, %v1197_v12  ;;  %250 = vmatpush1.bf16.msra.mxu0 %v138_v26  ;;  %v1439_v26 = vmov 8   ;;  %p1405_p1 = scmp.ne.s32.totalorder %s1188_s4, %s1404_s13  ;;  %p1410_p3 = scmp.lt.s32.totalorder %s1404_s13, %s1404_s13 }
  0x32   :  { %293 = vmatpush1.bf16.msra.mxu1 %v144_v28  ;;  %267 = vmatprep.mubr.bf16.mxu0 %v1437_v0 }
  0x33   :  { %310 = vmatprep.mubr.bf16.mxu1 %v1437_v0  ;;  %1261 = vset.pattern.permute.xlu1 %v1439_v26  ;;  %p1411_p4 = por %p1410_p3, %p1409_p2 }
  0x34   :  { %341 = vperm.xlu0 %1255, %v338_v29   ;;  %555 = vperm.xlu1 %1261, %v552_v23  }
  0x35   :  { %p1412_p5 = pnand %p1411_p4, %p1405_p1 }
  0x38   :  { %1211 = vmatmul.mubr.msk.bf16.vlgmr.msra.gmra.mxu0 %vm120_vm1, %v1197_v12  ;;  %1262 = vset.pattern.permute.xlu0 %v1439_v26 }
  0x39   :  { %1213 = vmatmul.mubr.msk.bf16.vlgmr.msra.gmra.mxu1 %vm120_vm1, %v1197_v12  ;;  %403 = vmatprep.mubr.bf16.mxu0 %v1437_v0 }
  0x3a   :  { %444 = vmatprep.mubr.bf16.mxu1 %v1437_v0 }
  0xab   :  { %v1258_v30 = vpop.permute.xlu0 %1257 }
  0xac   :  { %v1260_v32 = vunpack.i.h.bf16 %v1258_v30  ;;  %v1259_v33 = vunpack.i.l.bf16 %v1258_v30 }
  0xaf   :  { %v342_v27 = vpop.permute.xlu0 %341 }
  0xf0   :  { %v183_v31 = vpop.f32.mrf.mxu0 }
  0xf1   :  { %v226_v34 = vpop.f32.mrf.mxu1  ;;  %v184_v38 = vadd.f32 %v1259_v33, %v183_v31 }
  0xf2   :  { %v185_v35 = vpop.f32.mrf.mxu0  ;;  %v227_v41 = vadd.f32 %v1259_v33, %v226_v34 }
  0xf3   :  { %v228_v36 = vpop.f32.mrf.mxu1  ;;  %v186_v44 = vadd.f32 %v1259_v33, %v185_v35 }
  0xf4   :  { %v187_v37 = vpop.f32.mrf.mxu0  ;;  %v229_v48 = vadd.f32 %v1259_v33, %v228_v36 }
  0xf5   :  { %v188_v39 = vadd.f32 %v1260_v32, %v187_v37  ;;  %v230_v40 = vpop.f32.mrf.mxu1 }
  0xf6   :  { %v231_v42 = vadd.f32 %v1260_v32, %v230_v40  ;;  %v189_v43 = vpop.f32.mrf.mxu0 }
  0xf7   :  { %v321_v45 = vpack.c.bf16 %v188_v39, %v184_v38  ;;  %v190_v46 = vadd.f32 %v1260_v32, %v189_v43  ;;  %v232_v47 = vpop.f32.mrf.mxu1 }
  0xf8   :  { %v323_v49 = vpack.c.bf16 %v231_v42, %v227_v41  ;;  %v233_v50 = vadd.f32 %v1260_v32, %v232_v47  ;;  %v269_v51 = vpop.f32.mrf.mxu0 }
  0xf9   :  { %1264 = vtanh.bf16 %v321_v45  ;;  %v322_v52 = vpack.c.bf16 %v190_v46, %v186_v44  ;;  %v312_v53 = vpop.f32.mrf.mxu1  ;;  %v270_v58 = vadd.f32 %v1259_v33, %v269_v51 }
  0xfa   :  { %1266 = vtanh.bf16 %v323_v49  ;;  %v324_v54 = vpack.c.bf16 %v233_v50, %v229_v48  ;;  %v271_v55 = vpop.f32.mrf.mxu0  ;;  %v313_v61 = vadd.f32 %v1259_v33, %v312_v53 }
  0xfb   :  { %1268 = vtanh.bf16 %v322_v52  ;;  %v314_v56 = vpop.f32.mrf.mxu1  ;;  %v272_v1 = vadd.f32 %v1259_v33, %v271_v55 }
  0xfc   :  { %1270 = vtanh.bf16 %v324_v54  ;;  %v273_v57 = vpop.f32.mrf.mxu0  ;;  %v315_v5 = vadd.f32 %v1259_v33, %v314_v56 }
  0xfd   :  { %v274_v59 = vadd.f32 %v1260_v32, %v273_v57  ;;  %v316_v60 = vpop.f32.mrf.mxu1 }
  0xfe   :  { %v317_v62 = vadd.f32 %v1260_v32, %v316_v60  ;;  %v275_v63 = vpop.f32.mrf.mxu0 }
  0xff   :  { %v325_v2 = vpack.c.bf16 %v274_v59, %v270_v58  ;;  %v276_v3 = vadd.f32 %v1260_v32, %v275_v63  ;;  %v318_v4 = vpop.f32.mrf.mxu1 }
 0x100   :  { %v327_v6 = vpack.c.bf16 %v317_v62, %v313_v61  ;;  %v319_v7 = vadd.f32 %v1260_v32, %v318_v4 }
 0x101   :  { %1272 = vtanh.bf16 %v325_v2  ;;  %v326_v8 = vpack.c.bf16 %v276_v3, %v272_v1 }
 0x102   :  { %1274 = vtanh.bf16 %v327_v6  ;;  %v328_v9 = vpack.c.bf16 %v319_v7, %v315_v5 }
 0x103   :  { %1276 = vtanh.bf16 %v326_v8 }
 0x104   :  { %1278 = vtanh.bf16 %v328_v9  ;;  %v556_v9 = vpop.permute.xlu1 %555 }
 0x107   :  { %v1265_v10 = vpop.eup %1264 }
 0x108   :  { %v1267_v11 = vpop.eup %1266  ;;  %v348_v14 = vsel %vm124_vm0, %v1265_v10, 0 }
 0x109   :  { %v1269_v12 = vpop.eup %1268  ;;  %v354_v15 = vsel %vm124_vm0, %v1267_v11, 0 }
 0x10a   :  { %v1271_v13 = vpop.eup %1270  ;;  %1214 = vmatprep.subr.msk.bf16.mxu0 %vm124_vm0, %v1269_v12 }
 0x10b   :  { %1216 = vmatprep.subr.msk.bf16.mxu1 %vm124_vm0, %v1271_v13  ;;  %386 = vmatpush1.bf16.msra.mxu0 %v348_v14 }
 0x10c   :  { %427 = vmatpush1.bf16.msra.mxu1 %v354_v15 }
 0x10e   :  { %1215 = vmatmul.mubr.msk.bf16.vlgmr.msra.gmra.mxu0 %vm120_vm1, %v1488_v25 }
 0x10f   :  { %v1273_v16 = vpop.eup %1272  ;;  %1217 = vmatmul.mubr.msk.bf16.vlgmr.msra.gmra.mxu1 %vm120_vm1, %v1488_v25  ;;  %485 = vmatprep.mubr.bf16.mxu0 %v1437_v0 }
 0x110   :  { %v1275_v17 = vpop.eup %1274  ;;  %526 = vmatprep.mubr.bf16.mxu1 %v1437_v0  ;;  %v360_v20 = vsel %vm124_vm0, %v1273_v16, 0 }
 0x111   :  { %v1277_v18 = vpop.eup %1276  ;;  %v366_v21 = vsel %vm124_vm0, %v1275_v17, 0 }
 0x112   :  { %v1279_v19 = vpop.eup %1278  ;;  %1218 = vmatprep.subr.msk.bf16.mxu0 %vm124_vm0, %v1277_v18 }
 0x113   :  { %1220 = vmatprep.subr.msk.bf16.mxu1 %vm124_vm0, %v1279_v19  ;;  %468 = vmatpush1.bf16.msra.mxu0 %v360_v20 }
 0x114   :  { %509 = vmatpush1.bf16.msra.mxu1 %v366_v21 }
 0x116   :  { %1219 = vmatmul.mubr.msk.bf16.vlgmr.msra.gmra.mxu0 %vm120_vm1, %v1488_v25 }
 0x117   :  { %1221 = vmatmul.mubr.msk.bf16.vlgmr.msra.gmra.mxu1 %vm120_vm1, %v1488_v25  ;;  %619 = vmatprep.mubr.bf16.mxu0 %v1437_v0  ;;  %v768_v25 = vunpack.c.l.bf16 %v1532_v24 }
 0x118   :  { %660 = vmatprep.mubr.bf16.mxu1 %v1437_v0 }
 0x119   :  { %771 = vperm.xlu1 %1261, %v768_v25  }
 0x1ce   :  { %v405_v28 = vpop.f32.mrf.mxu0 }
 0x1cf   :  { %v406_v29 = vadd.f32 %v405_v28, %v342_v27  ;;  %v446_v30 = vpop.f32.mrf.mxu1 }
 0x1d0   :  { %v447_v31 = vadd.f32 %v446_v30, %v342_v27  ;;  %v407_v32 = vpop.f32.mrf.mxu0 }
 0x1d1   :  { %v535_v33 = vpack.c.bf16 %v406_v29, %v406_v29  ;;  %v408_v34 = vadd.f32 %v407_v32, %v342_v27  ;;  %v448_v35 = vpop.f32.mrf.mxu1 }
 0x1d2   :  { %v537_v36 = vpack.c.bf16 %v447_v31, %v447_v31  ;;  %v449_v37 = vadd.f32 %v448_v35, %v342_v27  ;;  %v409_v38 = vpop.f32.mrf.mxu0 }
 0x1d3   :  { %1280 = vtanh.bf16 %v535_v33  ;;  %v536_v39 = vpack.c.bf16 %v408_v34, %v408_v34  ;;  %v450_v40 = vpop.f32.mrf.mxu1 }
 0x1d4   :  { %1282 = vtanh.bf16 %v537_v36  ;;  %v538_v41 = vpack.c.bf16 %v449_v37, %v449_v37  ;;  %v410_v42 = vpop.f32.mrf.mxu0 }
 0x1d5   :  { %1284 = vtanh.bf16 %v536_v39  ;;  %v451_v43 = vpop.f32.mrf.mxu1 }
 0x1d6   :  { %1286 = vtanh.bf16 %v538_v41  ;;  %v487_v44 = vpop.f32.mrf.mxu0 }
 0x1d7   :  { %v488_v45 = vadd.f32 %v487_v44, %v342_v27  ;;  %v528_v46 = vpop.f32.mrf.mxu1 }
 0x1d8   :  { %v529_v47 = vadd.f32 %v528_v46, %v342_v27  ;;  %v489_v48 = vpop.f32.mrf.mxu0 }
 0x1d9   :  { %v539_v49 = vpack.c.bf16 %v488_v45, %v488_v45  ;;  %v490_v50 = vadd.f32 %v489_v48, %v342_v27  ;;  %v530_v51 = vpop.f32.mrf.mxu1 }
 0x1da   :  { %v541_v52 = vpack.c.bf16 %v529_v47, %v529_v47  ;;  %v531_v53 = vadd.f32 %v530_v51, %v342_v27  ;;  %v491_v54 = vpop.f32.mrf.mxu0 }
 0x1db   :  { %1288 = vtanh.bf16 %v539_v49  ;;  %v540_v55 = vpack.c.bf16 %v490_v50, %v490_v50  ;;  %v532_v56 = vpop.f32.mrf.mxu1 }
 0x1dc   :  { %1290 = vtanh.bf16 %v541_v52  ;;  %v542_v57 = vpack.c.bf16 %v531_v53, %v531_v53  ;;  %v492_v58 = vpop.f32.mrf.mxu0  ;;  %v777_v56 = vlaneseq }
 0x1dd   :  { %1292 = vtanh.bf16 %v540_v55  ;;  %v533_v59 = vpop.f32.mrf.mxu1  ;;  %v1440_v55 = vmov 839922192  }
 0x1de   :  { %1294 = vtanh.bf16 %v542_v57  ;;  %v1573_v58 = vshrl.u32 %v777_v56, 7 }
 0x1e1   :  { %v1281_v60 = vpop.eup %1280 }
 0x1e2   :  { %v1283_v61 = vpop.eup %1282  ;;  %v564_v1 = vsel %vm562_vm2, %v1281_v60, 0  ;;  %v772_v60 = vpop.permute.xlu1 %771 }
 0x1e3   :  { %v1285_v62 = vpop.eup %1284  ;;  %v570_v2 = vsel %vm562_vm2, %v1283_v61, 0 }
 0x1e4   :  { %v1287_v63 = vpop.eup %1286  ;;  %1222 = vmatprep.subr.msk.bf16.mxu0 %vm562_vm2, %v1285_v62 }
 0x1e5   :  { %1224 = vmatprep.subr.msk.bf16.mxu1 %vm562_vm2, %v1287_v63  ;;  %602 = vmatpush1.bf16.msra.mxu0 %v564_v1 }
 0x1e6   :  { %643 = vmatpush1.bf16.msra.mxu1 %v570_v2 }
 0x1e8   :  { %1223 = vmatmul.mubr.msk.bf16.vlgmr.msra.gmra.mxu0 %vm558_vm3, %v1526_v22 }
 0x1e9   :  { %v1289_v3 = vpop.eup %1288  ;;  %1225 = vmatmul.mubr.msk.bf16.vlgmr.msra.gmra.mxu1 %vm558_vm3, %v1526_v22  ;;  %701 = vmatprep.mubr.bf16.mxu0 %v1437_v0 }
 0x1ea   :  { %v1291_v4 = vpop.eup %1290  ;;  %742 = vmatprep.mubr.bf16.mxu1 %v1437_v0  ;;  %v576_v7 = vsel %vm562_vm2, %v1289_v3, 0 }
 0x1eb   :  { %v1293_v5 = vpop.eup %1292  ;;  %v582_v8 = vsel %vm562_vm2, %v1291_v4, 0 }
 0x1ec   :  { %v1295_v6 = vpop.eup %1294  ;;  %1226 = vmatprep.subr.msk.bf16.mxu0 %vm562_vm2, %v1293_v5 }
 0x1ed   :  { %1228 = vmatprep.subr.msk.bf16.mxu1 %vm562_vm2, %v1295_v6  ;;  %684 = vmatpush1.bf16.msra.mxu0 %v576_v7 }
 0x1ee   :  { %725 = vmatpush1.bf16.msra.mxu1 %v582_v8 }
 0x1f0   :  { %1227 = vmatmul.mubr.msk.bf16.vlgmr.msra.gmra.mxu0 %vm558_vm3, %v1526_v22 }
 0x1f1   :  { %1229 = vmatmul.mubr.msk.bf16.vlgmr.msra.gmra.mxu1 %vm558_vm3, %v1526_v22  ;;  %843 = vmatprep.mubr.bf16.mxu0 %v1437_v0 }
 0x1f2   :  { %884 = vmatprep.mubr.bf16.mxu1 %v1437_v0 }
 0x2a8   :  { %v621_v10 = vpop.f32.mrf.mxu0 }
 0x2a9   :  { %v622_v11 = vadd.f32 %v621_v10, %v556_v9  ;;  %v662_v12 = vpop.f32.mrf.mxu1 }
 0x2aa   :  { %v663_v13 = vadd.f32 %v662_v12, %v556_v9  ;;  %v623_v14 = vpop.f32.mrf.mxu0 }
 0x2ab   :  { %v751_v15 = vpack.c.bf16 %v622_v11, %v622_v11  ;;  %v624_v16 = vadd.f32 %v623_v14, %v556_v9  ;;  %v664_v17 = vpop.f32.mrf.mxu1 }
 0x2ac   :  { %v753_v18 = vpack.c.bf16 %v663_v13, %v663_v13  ;;  %v665_v19 = vadd.f32 %v664_v17, %v556_v9  ;;  %v625_v20 = vpop.f32.mrf.mxu0 }
 0x2ad   :  { %1296 = vtanh.bf16 %v751_v15  ;;  %v752_v21 = vpack.c.bf16 %v624_v16, %v624_v16  ;;  %v666_v23 = vpop.f32.mrf.mxu1 }
 0x2ae   :  { %1298 = vtanh.bf16 %v753_v18  ;;  %v754_v22 = vpack.c.bf16 %v665_v19, %v665_v19  ;;  %v626_v26 = vpop.f32.mrf.mxu0 }
 0x2af   :  { %1300 = vtanh.bf16 %v752_v21  ;;  %v667_v25 = vpop.f32.mrf.mxu1 }
 0x2b0   :  { %1302 = vtanh.bf16 %v754_v22  ;;  %v703_v27 = vpop.f32.mrf.mxu0 }
 0x2b1   :  { %v704_v28 = vadd.f32 %v703_v27, %v556_v9  ;;  %v744_v29 = vpop.f32.mrf.mxu1 }
 0x2b2   :  { %v745_v30 = vadd.f32 %v744_v29, %v556_v9  ;;  %v705_v31 = vpop.f32.mrf.mxu0 }
 0x2b3   :  { %v755_v32 = vpack.c.bf16 %v704_v28, %v704_v28  ;;  %v706_v33 = vadd.f32 %v705_v31, %v556_v9  ;;  %v746_v34 = vpop.f32.mrf.mxu1 }
 0x2b4   :  { %v757_v35 = vpack.c.bf16 %v745_v30, %v745_v30  ;;  %v747_v36 = vadd.f32 %v746_v34, %v556_v9  ;;  %v707_v37 = vpop.f32.mrf.mxu0 }
 0x2b5   :  { %1304 = vtanh.bf16 %v755_v32  ;;  %v756_v38 = vpack.c.bf16 %v706_v33, %v706_v33  ;;  %v748_v39 = vpop.f32.mrf.mxu1 }
 0x2b6   :  { %1306 = vtanh.bf16 %v757_v35  ;;  %v758_v40 = vpack.c.bf16 %v747_v36, %v747_v36  ;;  %v708_v41 = vpop.f32.mrf.mxu0 }
 0x2b7   :  { %1308 = vtanh.bf16 %v756_v38  ;;  %v749_v42 = vpop.f32.mrf.mxu1 }
 0x2b8   :  { %1310 = vtanh.bf16 %v758_v40 }
 0x2bb   :  { %v1297_v43 = vpop.eup %1296 }
 0x2bc   :  { %v1299_v44 = vpop.eup %1298  ;;  %v788_v47 = vsel %vm562_vm2, %v1297_v43, 0 }
 0x2bd   :  { %v1301_v45 = vpop.eup %1300  ;;  %v794_v48 = vsel %vm562_vm2, %v1299_v44, 0 }
 0x2be   :  { %v1303_v46 = vpop.eup %1302  ;;  %1230 = vmatprep.subr.msk.bf16.mxu0 %vm562_vm2, %v1301_v45 }
 0x2bf   :  { %1232 = vmatprep.subr.msk.bf16.mxu1 %vm562_vm2, %v1303_v46  ;;  %826 = vmatpush1.bf16.msra.mxu0 %v788_v47 }
 0x2c0   :  { %867 = vmatpush1.bf16.msra.mxu1 %v794_v48 }
 0x2c2   :  { %1231 = vmatmul.mubr.msk.bf16.vlgmr.msra.gmra.mxu0 %vm558_vm3, %v1532_v24 }
 0x2c3   :  { %v1305_v49 = vpop.eup %1304  ;;  %1233 = vmatmul.mubr.msk.bf16.vlgmr.msra.gmra.mxu1 %vm558_vm3, %v1532_v24  ;;  %925 = vmatprep.mubr.bf16.mxu0 %v1437_v0 }
 0x2c4   :  { %v1307_v50 = vpop.eup %1306  ;;  %966 = vmatprep.mubr.bf16.mxu1 %v1437_v0  ;;  %v800_v53 = vsel %vm562_vm2, %v1305_v49, 0  ;;  %v775_v0 = vunpack.c.l.s4 %v1440_v55 }
 0x2c5   :  { %v1309_v51 = vpop.eup %1308  ;;  %v806_v54 = vsel %vm562_vm2, %v1307_v50, 0 }
 0x2c6   :  { %v1311_v52 = vpop.eup %1310  ;;  %1234 = vmatprep.subr.msk.bf16.mxu0 %vm562_vm2, %v1309_v51  ;;  %v776_v57 = vunpack.c.0.s8 %v775_v0 }
 0x2c7   :  { %1236 = vmatprep.subr.msk.bf16.mxu1 %vm562_vm2, %v1311_v52  ;;  %908 = vmatpush1.bf16.msra.mxu0 %v800_v53 }
 0x2c8   :  { %949 = vmatpush1.bf16.msra.mxu1 %v806_v54  ;;  %v779_v59 = vsub.s32 %v776_v57, %v1573_v58 }
 0x2ca   :  { %1235 = vmatmul.mubr.msk.bf16.vlgmr.msra.gmra.mxu0 %vm558_vm3, %v1532_v24  ;;  %v780_v61 = vrot.slane %v772_v60, %v779_v59 }
 0x2cb   :  { %1237 = vmatmul.mubr.msk.bf16.vlgmr.msra.gmra.mxu1 %vm558_vm3, %v1532_v24 }
 0x2cc   :  { %v782_v2 = vcombine.high %v780_v61, %v780_v61 }
 0x382   :  { %v845_v62 = vpop.f32.mrf.mxu0 }
 0x383   :  { %v1576_v63 = vadd.f32 %v845_v62, %v780_v61  ;;  %v886_v1 = vpop.f32.mrf.mxu1 }
 0x384   :  { %v1578_v3 = vadd.f32 %v886_v1, %v780_v61  ;;  %v847_v4 = vpop.f32.mrf.mxu0 }
 0x385   :  { %v975_v24 = vsel %vm562_vm2, %v1576_v63, -inf  ;;  %v1582_v5 = vadd.f32 %v847_v4, %v782_v2  ;;  %v888_v6 = vpop.f32.mrf.mxu1 }
 0x386   :  { %v976_v7 = vrot.slane %v975_v24, 4  ;;  %v989_v8 = vsel %vm562_vm2, %v1578_v3, -inf  ;;  %v1586_v9 = vadd.f32 %v888_v6, %v782_v2  ;;  %v849_v10 = vpop.f32.mrf.mxu0 }
 0x387   :  { %v990_v11 = vrot.slane %v989_v8, 4  ;;  %v982_v12 = vsel %vm562_vm2, %v1582_v5, -inf  ;;  %v890_v13 = vpop.f32.mrf.mxu1 }
 0x388   :  { %v977_v14 = vmax.f32 %v975_v24, %v976_v7  ;;  %v983_v15 = vrot.slane %v982_v12, 4  ;;  %v996_v16 = vsel %vm562_vm2, %v1586_v9, -inf  ;;  %v850_v17 = vpop.f32.mrf.mxu0 }
 0x389   :  { %v991_v18 = vmax.f32 %v989_v8, %v990_v11  ;;  %v997_v19 = vrot.slane %v996_v16, 4  ;;  %v891_v20 = vpop.f32.mrf.mxu1 }
 0x38a   :  { %v978_v21 = vrot.slane %v977_v14, 2  ;;  %v984_v23 = vmax.f32 %v982_v12, %v983_v15  ;;  %v927_v22 = vpop.f32.mrf.mxu0 }
 0x38b   :  { %v992_v26 = vrot.slane %v991_v18, 2  ;;  %v998_v25 = vmax.f32 %v996_v16, %v997_v19  ;;  %v1592_v27 = vadd.f32 %v927_v22, %v780_v61  ;;  %v968_v28 = vpop.f32.mrf.mxu1 }
 0x38c   :  { %v979_v29 = vmax.f32 %v977_v14, %v978_v21  ;;  %v985_v30 = vrot.slane %v984_v23, 2  ;;  %v1594_v31 = vadd.f32 %v968_v28, %v780_v61  ;;  %v929_v32 = vpop.f32.mrf.mxu0 }
 0x38d   :  { %v993_v33 = vmax.f32 %v991_v18, %v992_v26  ;;  %v999_v34 = vrot.slane %v998_v25, 2  ;;  %v1003_v35 = vsel %vm562_vm2, %v1592_v27, -inf  ;;  %v930_v36 = vadd.f32 %v929_v32, %v782_v2  ;;  %v970_v37 = vpop.f32.mrf.mxu1 }
 0x38e   :  { %v980_v38 = vrot.slane %v979_v29, 1  ;;  %v986_v39 = vmax.f32 %v984_v23, %v985_v30  ;;  %v1004_v40 = vrot.slane %v1003_v35, 4  ;;  %v1017_v41 = vsel %vm562_vm2, %v1594_v31, -inf  ;;  %v931_v42 = vpop.f32.mrf.mxu0 }
 0x38f   :  { %v994_v43 = vrot.slane %v993_v33, 1  ;;  %v1000_v44 = vmax.f32 %v998_v25, %v999_v34  ;;  %v1018_v45 = vrot.slane %v1017_v41, 4  ;;  %v1010_v46 = vsel %vm562_vm2, %v930_v36, -inf  ;;  %v972_v47 = vpop.f32.mrf.mxu1 }
 0x390   :  { %v981_v48 = vmax.f32 %v979_v29, %v980_v38  ;;  %v987_v49 = vrot.slane %v986_v39, 1  ;;  %v1005_v50 = vmax.f32 %v1003_v35, %v1004_v40  ;;  %v1011_v51 = vrot.slane %v1010_v46, 4  ;;  %v932_v52 = vpop.f32.mrf.mxu0 }
 0x391   :  { %v995_v53 = vmax.f32 %v993_v33, %v994_v43  ;;  %v1001_v54 = vrot.slane %v1000_v44, 1  ;;  %v1019_v55 = vmax.f32 %v1017_v41, %v1018_v45  ;;  %v971_v0 = vadd.f32 %v970_v37, %v782_v2  ;;  %v973_v56 = vpop.f32.mrf.mxu1 }
 0x392   :  { %v1031_v57 = vsub.f32 %v1576_v63, %v981_v48  ;;  %v988_v59 = vmax.f32 %v986_v39, %v987_v49  ;;  %v1006_v60 = vrot.slane %v1005_v50, 2  ;;  %v1012_v61 = vmax.f32 %v1010_v46, %v1011_v51 }
 0x393   :  { %v1033_v62 = vsub.f32 %v1578_v3, %v995_v53  ;;  %v1002_v1 = vmax.f32 %v1000_v44, %v1001_v54  ;;  %v1020_v4 = vrot.slane %v1019_v55, 2  ;;  %v1024_v24 = vsel %vm562_vm2, %v971_v0, -inf }
 0x394   :  { %v1039_v6 = vmul.f32 1.442695, %v1031_v57  ;;  %v1032_v7 = vsub.f32 %v1582_v5, %v988_v59  ;;  %v1007_v8 = vmax.f32 %v1005_v50, %v1006_v60  ;;  %v1013_v10 = vrot.slane %v1012_v61, 2 }
 0x395   :  { %v1043_v11 = vmul.f32 1.442695, %v1033_v62  ;;  %v1034_v2 = vsub.f32 %v1586_v9, %v1002_v1  ;;  %v1021_v12 = vmax.f32 %v1019_v55, %v1020_v4  ;;  %v1025_v13 = vrot.slane %v1024_v24, 4 }
 0x396   :  { %1312 = vpow2.f32 %v1039_v6  ;;  %v1041_v63 = vmul.f32 1.442695, %v1032_v7  ;;  %v1008_v14 = vrot.slane %v1007_v8, 1  ;;  %v1014_v15 = vmax.f32 %v1012_v61, %v1013_v10 }
 0x397   :  { %1314 = vpow2.f32 %v1043_v11  ;;  %v1045_v3 = vmul.f32 1.442695, %v1034_v2  ;;  %v1022_v16 = vrot.slane %v1021_v12, 1  ;;  %v1026_v17 = vmax.f32 %v1024_v24, %v1025_v13 }
 0x398   :  { %1316 = vpow2.f32 %v1041_v63  ;;  %v1009_v18 = vmax.f32 %v1007_v8, %v1008_v14  ;;  %v1015_v19 = vrot.slane %v1014_v15, 1 }
 0x399   :  { %1318 = vpow2.f32 %v1045_v3  ;;  %v1023_v5 = vmax.f32 %v1021_v12, %v1022_v16  ;;  %v1027_v20 = vrot.slane %v1026_v17, 2 }
 0x39a   :  { %v1035_v21 = vsub.f32 %v1592_v27, %v1009_v18  ;;  %v1016_v23 = vmax.f32 %v1014_v15, %v1015_v19 }
 0x39b   :  { %v1037_v9 = vsub.f32 %v1594_v31, %v1023_v5  ;;  %v1028_v22 = vmax.f32 %v1026_v17, %v1027_v20 }
 0x39c   :  { %v1047_v26 = vmul.f32 1.442695, %v1035_v21  ;;  %v1036_v25 = vsub.f32 %v930_v36, %v1016_v23 }
 0x39d   :  { %v1051_v28 = vmul.f32 1.442695, %v1037_v9  ;;  %v1029_v29 = vrot.slane %v1028_v22, 1 }
 0x39e   :  { %1320 = vpow2.f32 %v1047_v26  ;;  %v1049_v30 = vmul.f32 1.442695, %v1036_v25 }
 0x39f   :  { %1322 = vpow2.f32 %v1051_v28  ;;  %v1030_v32 = vmax.f32 %v1028_v22, %v1029_v29 }
 0x3a0   :  { %1324 = vpow2.f32 %v1049_v30  ;;  %v1441_v30 = vmov 1983009808  }
 0x3a1   :  { %v1038_v33 = vsub.f32 %v971_v0, %v1030_v32  ;;  %v1146_v32 = vunpack.c.l.s4 %v1441_v30 }
 0x3a3   :  { %v1608_v34 = vpop.eup %1312  ;;  %v1053_v35 = vmul.f32 1.442695, %v1038_v33 }
 0x3a4   :  { %v1610_v37 = vpop.eup %1314  ;;  %v1055_v27 = vsel %vm562_vm2, %v1608_v34, 0.0 }
 0x3a5   :  { %v1614_v31 = vpop.eup %1316  ;;  %v1056_v38 = vrot.slane %v1055_v27, 4  ;;  %v1069_v36 = vsel %vm562_vm2, %v1610_v37, 0.0  ;;  %1326 = vpow2.f32 %v1053_v35 }
 0x3a6   :  { %v1618_v39 = vpop.eup %1318  ;;  %v1070_v40 = vrot.slane %v1069_v36, 4  ;;  %v1062_v41 = vsel %vm562_vm2, %v1614_v31, 0.0 }
 0x3a7   :  { %v1057_v42 = vadd.f32 %v1056_v38, %v1055_v27  ;;  %v1063_v43 = vrot.slane %v1062_v41, 4  ;;  %v1076_v44 = vsel %vm562_vm2, %v1618_v39, 0.0 }
 0x3a8   :  { %v1071_v45 = vadd.f32 %v1070_v40, %v1069_v36  ;;  %v1077_v46 = vrot.slane %v1076_v44, 4  ;;  %v1147_v36 = vunpack.c.0.s8 %v1146_v32 }
 0x3a9   :  { %v1058_v47 = vrot.slane %v1057_v42, 2  ;;  %v1064_v48 = vadd.f32 %v1063_v43, %v1062_v41 }
 0x3aa   :  { %v1072_v49 = vrot.slane %v1071_v45, 2  ;;  %v1078_v50 = vadd.f32 %v1077_v46, %v1076_v44 }
 0x3ab   :  { %v1624_v51 = vpop.eup %1320  ;;  %v1059_v52 = vadd.f32 %v1058_v47, %v1057_v42  ;;  %v1065_v53 = vrot.slane %v1064_v48, 2 }
 0x3ac   :  { %v1626_v54 = vpop.eup %1322  ;;  %v1073_v55 = vadd.f32 %v1072_v49, %v1071_v45  ;;  %v1079_v0 = vrot.slane %v1078_v50, 2  ;;  %v1083_v56 = vsel %vm562_vm2, %v1624_v51, 0.0  ;;  %v1150_v45 = vsub.s32 %v1147_v36, %v1573_v58 }
 0x3ad   :  { %v1630_v57 = vpop.eup %1324  ;;  %v1060_v59 = vrot.slane %v1059_v52, 1  ;;  %v1066_v60 = vadd.f32 %v1065_v53, %v1064_v48  ;;  %v1084_v61 = vrot.slane %v1083_v56, 4  ;;  %v1097_v62 = vsel %vm562_vm2, %v1626_v54, 0.0 }
 0x3ae   :  { %v1074_v1 = vrot.slane %v1073_v55, 1  ;;  %v1080_v4 = vadd.f32 %v1079_v0, %v1078_v50  ;;  %v1098_v24 = vrot.slane %v1097_v62, 4  ;;  %v1090_v6 = vsel %vm562_vm2, %v1630_v57, 0.0 }
 0x3af   :  { %v1061_v7 = vadd.f32 %v1060_v59, %v1059_v52  ;;  %v1067_v8 = vrot.slane %v1066_v60, 1  ;;  %v1085_v10 = vadd.f32 %v1084_v61, %v1083_v56  ;;  %v1091_v11 = vrot.slane %v1090_v6, 4 }
 0x3b0   :  { %v1075_v2 = vadd.f32 %v1074_v1, %v1073_v55  ;;  %v1081_v12 = vrot.slane %v1080_v4, 1  ;;  %v1099_v13 = vadd.f32 %v1098_v24, %v1097_v62 }
 0x3b1   :  { %1328 = vrcp.f32 %v1061_v7  ;;  %v1068_v63 = vadd.f32 %v1067_v8, %v1066_v60  ;;  %v1086_v14 = vrot.slane %v1085_v10, 2  ;;  %v1092_v15 = vadd.f32 %v1091_v11, %v1090_v6 }
 0x3b2   :  { %v1327_v3 = vpop.eup %1326  ;;  %1330 = vrcp.f32 %v1075_v2  ;;  %v1082_v16 = vadd.f32 %v1081_v12, %v1080_v4  ;;  %v1100_v17 = vrot.slane %v1099_v13, 2 }
 0x3b3   :  { %1332 = vrcp.f32 %v1068_v63  ;;  %v1087_v18 = vadd.f32 %v1086_v14, %v1085_v10  ;;  %v1093_v19 = vrot.slane %v1092_v15, 2  ;;  %v1104_v5 = vsel %vm562_vm2, %v1327_v3, 0.0 }
 0x3b4   :  { %1334 = vrcp.f32 %v1082_v16  ;;  %v1101_v20 = vadd.f32 %v1100_v17, %v1099_v13  ;;  %v1105_v21 = vrot.slane %v1104_v5, 4 }
 0x3b5   :  { %v1088_v23 = vrot.slane %v1087_v18, 1  ;;  %v1094_v9 = vadd.f32 %v1093_v19, %v1092_v15 }
 0x3b6   :  { %v1102_v22 = vrot.slane %v1101_v20, 1  ;;  %v1106_v26 = vadd.f32 %v1105_v21, %v1104_v5 }
 0x3b7   :  { %v1089_v25 = vadd.f32 %v1088_v23, %v1087_v18  ;;  %v1095_v28 = vrot.slane %v1094_v9, 1 }
 0x3b8   :  { %v1107_v29 = vrot.slane %v1106_v26, 2  ;;  %v1103_v35 = vadd.f32 %v1102_v22, %v1101_v20 }
 0x3b9   :  { %v1096_v33 = vadd.f32 %v1095_v28, %v1094_v9  ;;  %1336 = vrcp.f32 %v1089_v25 }
 0x3ba   :  { %v1108_v27 = vadd.f32 %v1107_v29, %v1106_v26 }
 0x3bb   :  { %1338 = vrcp.f32 %v1096_v33 }
 0x3bc   :  { %v1109_v38 = vrot.slane %v1108_v27, 1  ;;  %1340 = vrcp.f32 %v1103_v35 }
 0x3be   :  { %v1329_v40 = vpop.eup %1328  ;;  %v1110_v41 = vadd.f32 %v1109_v38, %v1108_v27 }
 0x3bf   :  { %v1331_v42 = vpop.eup %1330  ;;  %v1112_v46 = vmul.f32 %v1329_v40, %v1608_v34 }
 0x3c0   :  { %v1333_v43 = vpop.eup %1332  ;;  %1342 = vrcp.f32 %v1110_v41  ;;  %v1116_v48 = vmul.f32 %v1331_v42, %v1610_v37 }
 0x3c1   :  { %v1335_v44 = vpop.eup %1334  ;;  %v1114_v47 = vmul.f32 %v1333_v43, %v1614_v31 }
 0x3c2   :  { %v1118_v49 = vmul.f32 %v1335_v44, %v1618_v39 }
 0x3c3   :  { %v1238_v50 = vpack.c.bf16 %v1114_v47, %v1112_v46 }
 0x3c4   :  { %v1239_v52 = vpack.c.bf16 %v1118_v49, %v1116_v48 }
 0x3c5   :  { %v1151_v53 = vrot.slane %v1238_v50, %v1150_v45 }
 0x3c6   :  { %v1158_v55 = vrot.slane %v1239_v52, %v1150_v45  ;;  %v1337_v0 = vpop.eup %1336 }
 0x3c7   :  { %v1120_v61 = vmul.f32 %v1337_v0, %v1624_v51 }
 0x3c8   :  { %v1339_v56 = vpop.eup %1338  ;;  %v1159_v59 = vcombine.low %v1151_v53, %v1158_v55 }
 0x3c9   :  { %v1122_v60 = vmul.f32 %v1339_v56, %v1630_v57  ;;  %v1341_v58 = vpop.eup %1340 }
 0x3ca   :  { %1179 = vst [vmem:[#allocation8] sm:$0xff] %v1159_v59  ;;  %v1124_v31 = vmul.f32 %v1341_v58, %v1626_v54 }
 0x3cb   :  { %v1240_v34 = vpack.c.bf16 %v1122_v60, %v1120_v61 }
 0x3cd   :  { %v1343_v62 = vpop.eup %1342  ;;  %v1168_v39 = vrot.slane %v1240_v34, %v1150_v45 }
 0x3ce   :  { %v1126_v37 = vmul.f32 %v1343_v62, %v1327_v3 }
 0x3d0   :  { %v1241_v1 = vpack.c.bf16 %v1126_v37, %v1124_v31 }
 0x3d2   :  { %v1175_v4 = vrot.slane %v1241_v1, %v1150_v45 }
 0x3d4   :  { %v1176_v24 = vcombine.low %v1168_v39, %v1175_v4 }
 0x3d6   :  { %1180 = vst [vmem:[#allocation8 + $0x8] sm:$0xff] %v1176_v24 }
 0x3d7   :  { %1415 = shalt.err (!%p1412_p5)
}
 0x3d8   :  { %1190 = dma.vmem_to_hbm [thread:$0]  %s1188_s4, 256, %s1653_s5, [#allocation4]  }
 0x3d9   :  { %1428 = dma.done.wait [#allocation4], 256  }
 0x3da   :  { %1429 = vsyncadd [#allocation4], 4294967040 }
 0x3db   :  { %1194 = vsyncpa [#allocation3], 1 }
 0x3dc   :  { %1195 = vsyncpa [#allocation6], 1 }
 0x3dd   :  { %1196 = vsyncpa [#allocation4], 1 }

</bundles_post_ra>
